<compile_context>
chip_gen: v6e
topology: v6e:2x2x1
jax: 0.10.0
libtpu: 0.0.40
codegen_flags: <defaults>
</compile_context>

<pallas_src>
import functools

import jax
import jax.numpy as jnp
from jax.experimental import pallas as pl
from jax.experimental.pallas import tpu as pltpu


MAX_DST_TILE = 256        # dst-row tile for large graphs
SRC_TILE = 512            # src-column tile for large graphs (lane multiple)
SMALL_GRAPH_MAX = 1024    # below this, a single src block is used


def _round_up(n, m):
    return ((n + m - 1) // m) * m


_VMEM_LIMIT_CACHE = [None]


def _vmem_limit():
    """~100 MiB on 128-MiB-VMEM chips (v5e/v6e), 48 MiB on v7x (64 MiB)."""
    if _VMEM_LIMIT_CACHE[0] is None:
        try:
            cap = pltpu.get_tpu_info().vmem_capacity_bytes
        except Exception:
            cap = 64 * 1024 * 1024
        _VMEM_LIMIT_CACHE[0] = (100 * 1024 * 1024 if cap >= 128 * 1024 * 1024
                                else 48 * 1024 * 1024)
    return _VMEM_LIMIT_CACHE[0]


def _tiling(n):
    """(n_pad, dst_tile, src_tile, proj_tile) with all divisibility satisfied."""
    if n <= SMALL_GRAPH_MAX:
        # >= 2 dst tiles so a v7x megacore can split the parallel axis;
        # multiples of 32 keep int8 adjacency blocks layout-friendly.
        tile_rows = max(32, _round_up(-(-n // 2), 32))
        n_pad = 2 * tile_rows
        src_tile = n_pad                 # single src block
        proj_tile = tile_rows
    else:
        tile_rows = MAX_DST_TILE
        src_tile = SRC_TILE
        n_pad = _round_up(n, SRC_TILE)   # divisible by both 256 and 512
        proj_tile = SRC_TILE
    return n_pad, tile_rows, src_tile, proj_tile


# ---------------------------------------------------------------------------
# Kernel 1: row-tiled projection
#   acc = x @ [W | pad | W.a_src | W.a_dst]   (bf16 MXU, f32 acc)
#   outputs: h (bf16, lane-padded) and alpha logits (f32, [T, 2*heads])
# ---------------------------------------------------------------------------
def _proj_kernel(x_ref, w_ref, h_ref, alpha_ref, *, hc_pad):
    acc = jnp.dot(x_ref[...], w_ref[...], preferred_element_type=jnp.float32)
    h_ref[...] = acc[:, :hc_pad].astype(h_ref.dtype)
    alpha_ref[...] = acc[:, hc_pad:hc_pad + alpha_ref.shape[1]]


def _project(x, w_aug, *, hc_pad, heads, tile_rows):
    n_pad, f_in = x.shape
    f_aug = w_aug.shape[1]
    kernel = functools.partial(_proj_kernel, hc_pad=hc_pad)
    return pl.pallas_call(
        kernel,
        out_shape=(
            jax.ShapeDtypeStruct((n_pad, hc_pad), jnp.bfloat16),
            jax.ShapeDtypeStruct((n_pad, 2 * heads), jnp.float32),
        ),
        grid=(n_pad // tile_rows,),
        in_specs=[
            pl.BlockSpec((tile_rows, f_in), lambda i: (i, 0)),
            pl.BlockSpec((f_in, f_aug), lambda i: (0, 0)),
        ],
        out_specs=(
            pl.BlockSpec((tile_rows, hc_pad), lambda i: (i, 0)),
            pl.BlockSpec((tile_rows, 2 * heads), lambda i: (i, 0)),
        ),
        compiler_params=pltpu.CompilerParams(
            dimension_semantics=("parallel",),
            vmem_limit_bytes=_vmem_limit()),
    )(x, w_aug)


# ---------------------------------------------------------------------------
# Kernel 2: (dst-tile, src-tile) online-softmax attention + aggregation.
#   grid = (n_dst_tiles [parallel], n_src_tiles [arbitrary])
#   Accumulators m/l/acc live in VMEM scratch; output written at the last
#   src step (+ bias, optional ELU / masked log_softmax).
# ---------------------------------------------------------------------------
def _attn_kernel(h_src_ref, asrc_ref, adst_ref, adj_ref, bias_ref, o_ref,
                 m_ref, l_ref, acc_ref, *, heads, out_ch, apply_elu,
                 apply_log_softmax, negative_slope=0.2):
    k = pl.program_id(1)
    nk = pl.num_programs(1)
    hc = heads * out_ch
    neg_big = jnp.float32(-1e30)

    @pl.when(k == 0)
    def _():
        m_ref[...] = jnp.full_like(m_ref, neg_big)
        l_ref[...] = jnp.zeros_like(l_ref)
        acc_ref[...] = jnp.zeros_like(acc_ref)

    edge = adj_ref[...] != 0                         # [T, S] bool (int8 stream)
    h_src = h_src_ref[...]                           # [S, hc_pad] bf16
    adst = adst_ref[...]                             # [T, heads]  f32
    asrc = asrc_ref[...]                             # [heads, S]  f32

    for hd in range(heads):
        cols = slice(hd * out_ch, (hd + 1) * out_ch)
        e = adst[:, hd:hd + 1] + asrc[hd:hd + 1, :]            # [T, S]
        e = jnp.maximum(e, negative_slope * e)                 # LeakyReLU
        e = jnp.where(edge, e, neg_big)                        # mask non-edges
        m_prev = m_ref[:, hd:hd + 1]
        m_new = jnp.maximum(m_prev, jnp.max(e, axis=1, keepdims=True))
        a = jnp.exp(m_prev - m_new)                            # rescale factor
        p = jnp.exp(e - m_new)                                 # masked -> ~0
        l_ref[:, hd:hd + 1] = a * l_ref[:, hd:hd + 1] + jnp.sum(
            p, axis=1, keepdims=True)
        agg = jnp.dot(p.astype(jnp.bfloat16), h_src[:, cols],
                      preferred_element_type=jnp.float32)      # [T, C]
        acc_ref[:, cols] = a * acc_ref[:, cols] + agg
        m_ref[:, hd:hd + 1] = m_new

    @pl.when(k == nk - 1)
    def _():
        # exact normalization (finalize only; cheap)
        for hd in range(heads):
            cols = slice(hd * out_ch, (hd + 1) * out_ch)
            denom = jnp.maximum(l_ref[:, hd:hd + 1], 1e-20)
            acc_ref[:, cols] = acc_ref[:, cols] / denom
        out = acc_ref[...] + bias_ref[...]
        if apply_elu:
            out = jnp.where(out > 0, out,
                            jnp.exp(jnp.minimum(out, 0.0)) - 1.0)
        if apply_log_softmax:
            col = jax.lax.broadcasted_iota(jnp.int32, out.shape, 1)
            zm = jnp.where(col < hc, out, neg_big)             # ignore pad cols
            mm = jnp.max(zm, axis=1, keepdims=True)
            z = zm - mm
            lse = jnp.log(jnp.sum(jnp.exp(z), axis=1, keepdims=True))
            out = z - lse
        o_ref[...] = out.astype(o_ref.dtype)


def _attention(h, asrc_t, adst, adj, bias_pad, *, heads, out_ch, tile_rows,
               src_tile, apply_elu, apply_log_softmax, out_dtype):
    n_pad, hc_pad = h.shape
    kernel = functools.partial(
        _attn_kernel, heads=heads, out_ch=out_ch,
        apply_elu=apply_elu, apply_log_softmax=apply_log_softmax)
    return pl.pallas_call(
        kernel,
        out_shape=jax.ShapeDtypeStruct((n_pad, hc_pad), out_dtype),
        grid=(n_pad // tile_rows, n_pad // src_tile),
        in_specs=[
            pl.BlockSpec((src_tile, hc_pad), lambda i, k: (k, 0)),    # h src
            pl.BlockSpec((heads, src_tile), lambda i, k: (0, k)),     # a_src^T
            pl.BlockSpec((tile_rows, heads), lambda i, k: (i, 0)),    # a_dst
            pl.BlockSpec((tile_rows, src_tile), lambda i, k: (i, k)), # adj i8
            pl.BlockSpec((1, hc_pad), lambda i, k: (0, 0)),           # bias
        ],
        out_specs=pl.BlockSpec((tile_rows, hc_pad), lambda i, k: (i, 0)),
        scratch_shapes=[
            pltpu.VMEM((tile_rows, heads), jnp.float32),   # running max  m
            pltpu.VMEM((tile_rows, heads), jnp.float32),   # running sum  l
            pltpu.VMEM((tile_rows, hc_pad), jnp.float32),  # running acc
        ],
        compiler_params=pltpu.CompilerParams(
            dimension_semantics=("parallel", "arbitrary"),
            vmem_limit_bytes=_vmem_limit()),
    )(h, asrc_t, adst, adj, bias_pad)


# ---------------------------------------------------------------------------
# Layer + model wrappers
# ---------------------------------------------------------------------------
def gat_conv(x_pad, adj, W, a_src, a_dst, bias, *, heads, out_ch, tile_rows,
             src_tile, proj_tile, apply_elu=False, apply_log_softmax=False,
             out_dtype=jnp.float32):
    f_in = W.shape[0]
    hc = heads * out_ch
    hc_pad = _round_up(hc, 128)

    # Fold the attention vectors into the projection matmul:
    #   x @ [W | 0-pad | W.a_src | W.a_dst]  ->  h, alpha_src, alpha_dst.
    w_r = W.reshape(f_in, heads, out_ch)
    w_asrc = jnp.einsum("fhc,hc->fh", w_r, a_src)          # [f_in, heads]
    w_adst = jnp.einsum("fhc,hc->fh", w_r, a_dst)
    w_aug = jnp.concatenate(
        [W, jnp.zeros((f_in, hc_pad - hc), W.dtype), w_asrc, w_adst], axis=1)
    w_aug = jnp.pad(
        w_aug, ((0, x_pad.shape[1] - f_in), (0, 0))).astype(jnp.bfloat16)

    h, alpha = _project(x_pad.astype(jnp.bfloat16), w_aug,
                        hc_pad=hc_pad, heads=heads, tile_rows=proj_tile)

    # tiny [N, heads] glue (f32 logits; no re-read of the big h slab)
    asrc_t = alpha[:, :heads].T                            # [heads, n_pad]
    adst = alpha[:, heads:]                                # [n_pad, heads]

    bias_pad = jnp.pad(bias.astype(jnp.float32), ((0, 0), (0, hc_pad - hc)))

    return _attention(h, asrc_t, adst, adj, bias_pad, heads=heads,
                      out_ch=out_ch, tile_rows=tile_rows, src_tile=src_tile,
                      apply_elu=apply_elu,
                      apply_log_softmax=apply_log_softmax,
                      out_dtype=out_dtype)


def gat_forward(x, edge_index, params):
    """Full GAT forward: gat1 -> ELU -> gat2 -> log_softmax."""
    (W1, as1, ad1, b1, H, Ch), (W2, as2, ad2, b2) = params
    N = x.shape[0]
    n_pad, tile_rows, src_tile, proj_tile = _tiling(N)

    # glue: dense int8 adjacency mask (adj[dst, src] = 1) with self-loops.
    # TODO(synk): for large sparse graphs replace with a scalar-prefetch
    # gathered-neighbor (CSR) formulation (O(N*deg) instead of O(N^2)).
    adj = jnp.zeros((n_pad, n_pad), jnp.int8)
    adj = adj.at[edge_index[1], edge_index[0]].set(1)
    adj = adj.at[jnp.arange(N), jnp.arange(N)].set(1)

    x_pad = jnp.pad(x, ((0, n_pad - N), (0, 0)))

    h1 = gat_conv(x_pad, adj, W1, as1, ad1, b1, heads=H, out_ch=Ch,
                  tile_rows=tile_rows, src_tile=src_tile, proj_tile=proj_tile,
                  apply_elu=True, out_dtype=jnp.bfloat16)
    f_out = W2.shape[1]
    out = gat_conv(h1, adj, W2, as2, ad2, b2, heads=1, out_ch=f_out,
                   tile_rows=tile_rows, src_tile=src_tile, proj_tile=proj_tile,
                   apply_log_softmax=True, out_dtype=jnp.float32)
    return out[:N, :f_out]


def _glorot(key, shape):
    fan_in, fan_out = shape[0], shape[-1]
    lim = (6.0 / (fan_in + fan_out)) ** 0.5
    return jax.random.uniform(key, shape, jnp.float32, -lim, lim)


if __name__ == "__main__":
    key = jax.random.PRNGKey(0)
    kx, k1, k2, k3, k4, k5, k6 = jax.random.split(key, 7)

    # small synthetic graph: 16 nodes, in=8, hidden=8, heads=2, out=4
    N, Fin, Fhid, Fout, H = 16, 8, 8, 4, 2
    x = jax.random.normal(kx, (N, Fin), jnp.float32)

    # deterministic ring graph, both directions (no duplicate edges)
    idx = jnp.arange(N)
    src = jnp.concatenate([idx, (idx + 1) % N])
    dst = jnp.concatenate([(idx + 1) % N, idx])
    edge_index = jnp.stack([src, dst]).astype(jnp.int32)   # [2, E], E=32

    # deterministic parameter init (GATConv shapes)
    W1 = _glorot(k1, (Fin, H * Fhid))
    a_src1 = _glorot(k2, (H, Fhid))
    a_dst1 = _glorot(k3, (H, Fhid))
    b1 = jnp.zeros((1, H * Fhid), jnp.float32)

    W2 = _glorot(k4, (H * Fhid, Fout))
    a_src2 = _glorot(k5, (1, Fout))
    a_dst2 = _glorot(k6, (1, Fout))
    b2 = jnp.zeros((1, Fout), jnp.float32)

    params = ((W1, a_src1, a_dst1, b1, H, Fhid), (W2, a_src2, a_dst2, b2))

    out = gat_forward(x, edge_index, params)
    out = jax.block_until_ready(out)
    assert out.shape == (N, Fout)
    assert bool(jnp.all(jnp.isfinite(out)))
    # log_softmax rows must exponentiate-sum to ~1
    assert bool(jnp.allclose(jnp.sum(jnp.exp(out), axis=1), 1.0, atol=1e-2))
    print("KERNEL_OK")
</pallas_src>

<mosaic_0001>
module attributes {stable_mosaic.version = 11 : i64} {
  func.func @_proj_kernel(%arg0: i32, %arg1: memref<32x8xbf16, #tpu.memory_space<vmem>>, %arg2: memref<8x132xbf16, #tpu.memory_space<vmem>>, %arg3: memref<32x128xbf16, #tpu.memory_space<vmem>>, %arg4: memref<32x4xf32, #tpu.memory_space<vmem>>) attributes {dimension_semantics = [#tpu.dimension_semantics<parallel>], iteration_bounds = array<i64: 2>, scalar_prefetch = 0 : i64, scratch_operands = 0 : i64, tpu.core_type = #tpu.core_type<tc>, window_params = [{transform_indices = @transform_0, window_bounds = array<i64: 32, 8>}, {pipeline_mode = #tpu.pipeline_mode<synchronous>, transform_indices = @transform_1, window_bounds = array<i64: 8, 132>}, {transform_indices = @transform_2, window_bounds = array<i64: 32, 128>}, {transform_indices = @transform_3, window_bounds = array<i64: 32, 4>}]} {
    %c0 = arith.constant 0 : index
    %c0_0 = arith.constant 0 : index
    %0 = vector.load %arg1[%c0, %c0_0] : memref<32x8xbf16, #tpu.memory_space<vmem>>, vector<32x8xbf16>
    %c0_1 = arith.constant 0 : index
    %c0_2 = arith.constant 0 : index
    %1 = vector.load %arg2[%c0_1, %c0_2] : memref<8x132xbf16, #tpu.memory_space<vmem>>, vector<8x132xbf16>
    %cst = arith.constant dense<0.000000e+00> : vector<32x132xf32>
    %2 = tpu.matmul %0, %1, %cst {dimension_numbers = #tpu.dot_dimension_numbers<[1], [0], [0], [1], [0, 0, 1, 1], [], []>} : vector<32x8xbf16>, vector<8x132xbf16>, vector<32x132xf32> -> vector<32x132xf32>
    %3 = vector.extract_strided_slice %2 {offsets = [0, 0], sizes = [32, 128], strides = [1, 1]} : vector<32x132xf32> to vector<32x128xf32>
    %4 = arith.truncf %3 : vector<32x128xf32> to vector<32x128xbf16>
    %c0_3 = arith.constant 0 : index
    %c0_4 = arith.constant 0 : index
    %5 = vector.load %arg3[%c0_3, %c0_4] : memref<32x128xbf16, #tpu.memory_space<vmem>>, vector<32x128xbf16>
    tpu.vector_store %arg3[%c0_3, %c0_4], %4 {strides = array<i32>} : memref<32x128xbf16, #tpu.memory_space<vmem>>, vector<32x128xbf16>,
    %6 = vector.extract_strided_slice %2 {offsets = [0, 128], sizes = [32, 4], strides = [1, 1]} : vector<32x132xf32> to vector<32x4xf32>
    %c0_5 = arith.constant 0 : index
    %c0_6 = arith.constant 0 : index
    %7 = vector.load %arg4[%c0_5, %c0_6] : memref<32x4xf32, #tpu.memory_space<vmem>>, vector<32x4xf32>
    tpu.vector_store %arg4[%c0_5, %c0_6], %6 {strides = array<i32>} : memref<32x4xf32, #tpu.memory_space<vmem>>, vector<32x4xf32>,
    return
  }
  func.func @transform_0(%arg0: i32) -> (i32, i32) {
    %c0_i32 = arith.constant 0 : i32
    %c0_i32_0 = arith.constant 0 : i32
    return %arg0, %c0_i32 : i32, i32
  }
  func.func @transform_1(%arg0: i32) -> (i32, i32) {
    %c0_i32 = arith.constant 0 : i32
    %c0_i32_0 = arith.constant 0 : i32
    %c0_i32_1 = arith.constant 0 : i32
    return %c0_i32, %c0_i32_0 : i32, i32
  }
  func.func @transform_2(%arg0: i32) -> (i32, i32) {
    %c0_i32 = arith.constant 0 : i32
    %c0_i32_0 = arith.constant 0 : i32
    return %arg0, %c0_i32 : i32, i32
  }
  func.func @transform_3(%arg0: i32) -> (i32, i32) {
    %c0_i32 = arith.constant 0 : i32
    %c0_i32_0 = arith.constant 0 : i32
    return %arg0, %c0_i32 : i32, i32
  }
}

</mosaic_0001>

<bundles_post_ra>
// kernel: tpu_custom_call.1
= control target key start
LH: loop header
LB: loop body
LE: loop exit
PB: predicated region body
PF: predicated region fallthrough
CT: control target
= control target key end

     0   :  { %9 = vsyncpa [#allocation3], 0  ;;  %s695_s0 = inlined_call_operand.vmem [shape: bf16[64,8], index: 0, kind: input, shape index: {}]   ;;  %s696_s1 = inlined_call_operand.vmem [shape: bf16[8,132], index: 1, kind: input, shape index: {}]   ;;  %s697_s2 = inlined_call_operand.hbm [shape: bf16[64,128], index: 2, kind: output, shape index: {0}]   ;;  %s698_s3 = inlined_call_operand.vmem [shape: f32[64,4], index: 3, kind: output, shape index: {1}]  }
   0x1   :  { %11 = vsyncpa [#allocation3 + $0x1], 0  ;;  %s584_s12 = smov 0   ;;  %s586_s13 = smov 0  }
   0x2   :  { %s588_s14 = smov 0   ;;  %s590_s15 = smov 0  }
   0x3 LB: > { %s605_s16 = sadd.s32 4294967295, %s558_s15   ;;  %s409_s17 = sadd.s32 4294967294, %s558_s15   ;;  %s558_s15 = sphi %s590_s15, %s704_s15   ;;  %s554_s14 = sphi %s588_s14, %s703_s14   ;;  %s550_s13 = sphi %s586_s13, %s702_s13   ;;  %s546_s12 = sphi %s584_s12, %s701_s12  }
   0x4   : > { %s609_s18 = sadd.s32 1, %s558_s15   ;;  %s71_s19 = sadd.s32 1, %s554_s14 }
   0x5   : > { %s68_s20 = ssub.s32 %s558_s15, %s609_s18  ;;  %p81_p0 = scmp.ne.s32.totalorder %s554_s14, %s550_s13 }
   0x6   : > { %p69_p1 = scmp.eq.s32.totalorder %s68_s20, 0  ;;  %p82_p2 = scmp.eq.s32.totalorder %s605_s16, 1 }
   0x7   : > { %p87_p3 = scmp.ne.s32.totalorder %s550_s13, %s546_s12  ;;  %p88_p4 = scmp.eq.s32.totalorder %s409_s17, 1 }
   0x8   : > { %s620_s21 = scalar_select %p69_p1, %s554_s14, %s71_s19  }
   0x9   : > { %p622_p5 = por %p82_p2, %p81_p0  ;;  %p626_p6 = por %p88_p4, %p87_p3 }
   0xa   : > { %p412_p7 = scmp.ge.s32.totalorder %s558_s15, 1  ;;  %p144_p8 = scmp.lt.s32.totalorder %s558_s15, 3 }
   0xc   : > { %p145_p9 = pnand %p412_p7, %p144_p8 }
   0xd   : > { %s414_s26 = sshll.u32 (!%p145_p9), %s605_s16, 2  ;;  %s163_s4 = sand.u32 (!%p145_p9), 1, %s550_s13  }
   0xe   : > { %148 = sbr.rel (%p145_p9) target bundleno = 240 (0xf0), region = 28  ;;  %p174_p10 = scmp.lt.s32.totalorder (!%p145_p9), %s414_s26, 7 }
   0xf   : > { %s413_s5 = sshll.u32 (!%p145_p9), %s163_s4, 4  ;;  %s438_s17 = sshll.u32 (!%p145_p9), %s605_s16, 8 }
  0x10   : > { %s165_s10 = scalar_lea.vmem (!%p145_p9), [#allocation2], %s413_s5  ;;  %s650_s24 = scalar_lea.hbm (!%p145_p9), %s697_s2, %s438_s17 }
  0x11   : > { %s318_s11 = sshll.u32 (!%p145_p9), %s165_s10, 4  ;;  %s655_s16 = scalar_lea.sflag (!%p145_p9), [#allocation3], %s163_s4  ;;  %s645_s11 = int_to_ptr.vmem [resolvable:$true] %s318_s11 }
  0x12   : > { %s498_s25 = scalar_lea.vmem (!%p145_p9), %s645_s11, 256 }
  0x13   : > { %v191_v0 = vld [vmem:[%s696_s1] sm:$0xff]  ;;  %vm214_vm0 = vcmask 1043456   ;;  %v560_v3 = vmov 0   ;;  %s706_s26 = smov (!%p174_p10, %s414_s26), 7  ;;  %vm207_vm1 = vcmask 64512   ;;  %vm294_vm2 = vcmask 31744   ;;  %p499_p11 = scmp.ne.s32.totalorder %s645_s11, %s498_s25 }
  0x14   : > { %v421_v1 = vcombine.high %v191_v0, %v191_v0  ;;  %v420_v2 = vcombine.low %v191_v0, %v191_v0  ;;  %253 = vmatprep.mubr.bf16.mxu0 %v560_v3  ;;  %263 = vmatprep.mubr.bf16.mxu1 %v560_v3  ;;  %s415_s27 = sshll.u32 %s706_s26, 2  ;;  %s417_s6 = sshll.u32 %s706_s26, 3 }
  0x15   : > { %s177_s30 = scalar_lea.vmem %s695_s0, %s415_s27  ;;  %s184_s9 = scalar_lea.vmem %s698_s3, %s417_s6 }
  0x16   : > { %422 = vmatprep.subr.msk.bf16.mxu0 %vm214_vm0, %v421_v1  ;;  %450 = vmatprep.subr.msk.bf16.mxu1 %vm214_vm0, %v421_v1  ;;  %v216_v4 = vsel %vm214_vm0, %v420_v2, 0  ;;  %v496_v5 = vld [vmem:[%s177_s30] sm:$0xff]   ;;  %v497_v6 = vld [vmem:[%s177_s30 + $0x8] sm:$0xff]   ;;  %p500_p12 = pnand %p499_p11, %p622_p5  ;;  %s561_s26 = smov [#allocation2]  }
  0x17   : > { %236 = vmatpush1.bf16.msra.mxu0 %v216_v4  ;;  %451 = vmatpush1.bf16.msra.mxu1 %v216_v4  ;;  %s502_s27 = sshll.u32 %s561_s26, 4  ;;  %s503_s27 = int_to_ptr.vmem [resolvable:$false] %s502_s27 }
  0x18   : > { %p501_p13 = pneg %p500_p12  ;;  %s504_s28 = scalar_lea.vmem %s503_s27, 512 }
  0x19   : > { %p505_p0 = scmp.lt.s32.totalorder %s645_s11, %s503_s27  ;;  %p506_p1 = scmp.lt.s32.totalorder %s504_s28, %s498_s25 }
  0x1a   : > { %423 = vmatmul.mubr.msk.bf16.vlgmr.msra.gmra.mxu0 %vm207_vm1, %v496_v5  ;;  %424 = vmatmul.mubr.msk.bf16.vlgmr.msra.gmra.mxu1 %vm207_vm1, %v497_v6 }
  0x1b   : > { %p507_p2 = por %p506_p1, %p505_p0 }
  0x1d   : > { %p508_p3 = pnand %p507_p2, %p501_p13 }
  0xda   : > { %v255_v7 = vpop.f32.mrf.mxu0  ;;  %v265_v8 = vpop.f32.mrf.mxu1 }
  0xdc   : > { %v257_v9 = vpop.f32.mrf.mxu0  ;;  %v267_v10 = vpop.f32.mrf.mxu1 }
  0xdd   : > { %295 = vst.msk [vmem:[%s184_s9] sm:$0xff] %vm294_vm2, %v257_v9  ;;  %297 = vst.msk [vmem:[%s184_s9 + $0x10] sm:$0xff] %vm294_vm2, %v267_v10 }
  0xde   : > { %v259_v11 = vpop.f32.mrf.mxu0  ;;  %v269_v13 = vpop.f32.mrf.mxu1 }
  0xdf   : > { %v442_v12 = vpack.c.bf16 %v259_v11, %v255_v7  ;;  %v447_v14 = vpack.c.bf16 %v269_v13, %v265_v8 }
  0xe0   : > { %v261_v15 = vpop.f32.mrf.mxu0  ;;  %v271_v16 = vpop.f32.mrf.mxu1 }
  0xe1   : > { %443 = vst [vmem:[%s165_s10] sm:$0xff] %v442_v12   ;;  %296 = vst.msk [vmem:[%s184_s9 + $0x8] sm:$0xff] %vm294_vm2, %v261_v15 }
  0xe2   : > { %449 = vst [vmem:[%s165_s10 + $0x8] sm:$0xff] %v447_v14   ;;  %298 = vst.msk [vmem:[%s184_s9 + $0x18] sm:$0xff] %vm294_vm2, %v271_v16 }
  0xe3   : > { %511 = shalt.err (!%p508_p3)
}
  0xe4   : > { %s512_s29 = scalar_lea.hbm %s650_s24, 256  ;;  %s516_s5 = scalar_lea.hbm %s697_s2, 512 }
  0xe5   : > { %p513_p4 = scmp.ne.s32.totalorder %s650_s24, %s512_s29  ;;  %p517_p9 = scmp.lt.s32.totalorder %s650_s24, %s697_s2 }
  0xe6   : > { %p518_p10 = scmp.lt.s32.totalorder %s516_s5, %s512_s29 }
  0xe7   : > { %p514_p7 = pnand %p513_p4, %p622_p5 }
  0xe8   : > { %p519_p11 = por %p518_p10, %p517_p9 }
  0xe9   : > { %p515_p8 = pneg %p514_p7 }
  0xeb   : > { %p520_p12 = pnand %p519_p11, %p515_p8 }
  0xed   : > { %523 = shalt.err (!%p520_p12)
}
  0xee   : > { %s562_s8 = smov 64   ;;  %s563_s9 = smov 4  }
  0xef   : > { %452 = dma.vmem_to_hbm [thread:$0]  (%p622_p5), %s645_s11, 256, %s650_s24, %s655_s16, %s562_s8, %s562_s8, %s563_s9  }
  0xf0 PF: > { %p458_p13 = scmp.ge.s32.totalorder %s558_s15, 2  ;;  %s337_s10 = sand.u32 1, %s546_s12  }
  0xf1   : > { %s338_s17 = scalar_lea.sflag [#allocation3], %s337_s10 }
  0xf2   : > { %p455_p0 = pnand %p458_p13, %p626_p6 }
  0xf4   : > { %p456_p1 = pneg %p455_p0 }
  0xf6   : > { %541 = dma.done.wait (%p456_p1), %s338_s17, 256  }
  0xf7   : > { %543 = vsyncadd (%p456_p1), %s338_s17, 4294967040  ;;  %p14_p2 = scmp.ge.s32.totalorder %s609_s18, 4   ;;  %s701_s12 = smov %s550_s13 }
  0xf8   : > { %s702_s13 = smov %s554_s14  ;;  %s703_s14 = smov %s620_s21 }
  0xf9   : > { %s704_s15 = smov %s609_s18  ;;  %16 = sbr.rel (!%p14_p2) target bundleno = 3 (0x3), region = 75 }
  0xfe   :  { %351 = vsyncpa [#allocation3], 1 }
  0xff   :  { %353 = vsyncpa [#allocation3 + $0x1], 1 }

</bundles_post_ra>
